<compile_context>
chip_gen: v7x
topology: tpu7x:2x2x1
jax: 0.10.0
libtpu: 0.0.40
codegen_flags: <defaults>
</compile_context>

<pallas_src>
import functools
from typing import NamedTuple, Optional, Tuple

import jax
import jax.numpy as jnp
from jax.experimental import pallas as pl
from jax.experimental.pallas import tpu as pltpu


class ModulationOut(NamedTuple):
    shift: jax.Array
    scale: jax.Array
    gate: jax.Array


# --------------------------------------------------------------------------- kernel

def _modulation_kernel(vec_ref, w_ref, b_ref, out_ref, acc_ref):
    """One (n, k) grid step: acc[n-tile] += silu(vec)[:, k-tile] @ W[k-tile, n-tile]."""
    k = pl.program_id(1)

    @pl.when(k == 0)
    def _():
        acc_ref[...] = jnp.zeros_like(acc_ref)

    v = vec_ref[...].astype(jnp.float32)                      # SiLU in f32 (VPU)
    s = (v * jax.nn.sigmoid(v)).astype(jnp.bfloat16)          # bf16 operands to the MXU
    acc_ref[...] += jnp.dot(s, w_ref[...], preferred_element_type=jnp.float32)

    @pl.when(k == pl.num_programs(1) - 1)
    def _():
        out_ref[...] = (acc_ref[...] + b_ref[...].astype(jnp.float32)).astype(out_ref.dtype)


# --------------------------------------------------------------------------- wrapper

def _pick_tile(total: int, target: int, align: int) -> int:
    """Largest divisor of `total` that is a multiple of `align` and <= target.
    Falls back to the full extent (block dim == array dim is always legal)."""
    if total % align != 0 or total <= align:
        return total
    t = min(target, total)
    t -= t % align
    while t >= align:
        if total % t == 0:
            return t
        t -= align
    return total


def modulation_linear(vec, w, b, *, tn_target=1536, tk_target=1536,
                      out_dtype=jnp.float32):
    """silu(vec) @ w + b, tiled over output columns (parallel) and K (reduction)."""
    B, D = vec.shape
    Dw, N = w.shape
    assert Dw == D and b.shape == (N,)

    tn = _pick_tile(N, tn_target, 128)    # lane-dense output tiles when possible
    tk = _pick_tile(D, tk_target, 128)
    grid = (N // tn, D // tk)

    w_bf16 = w.astype(jnp.bfloat16)       # halve weight DMA bytes, bf16 MXU rate
    b2 = b.reshape(1, N)

    # VMEM budget: double-buffered input/weight/bias/output tiles + f32 accumulator,
    # with 2x headroom, clamped so it stays comfortably inside v7x's 64 MiB VMEM.
    per_step = (B * tk * 4) + (tk * tn * 2) + (tn * 4) + (B * tn * 4)
    vmem_bytes = int(min(max(2 * (2 * per_step + B * tn * 4), 4 << 20), 48 << 20))

    return pl.pallas_call(
        _modulation_kernel,
        out_shape=jax.ShapeDtypeStruct((B, N), out_dtype),
        grid=grid,
        in_specs=[
            pl.BlockSpec((B, tk), lambda n, k: (0, k)),       # silu input slice
            pl.BlockSpec((tk, tn), lambda n, k: (k, n)),      # weight tile (bf16)
            pl.BlockSpec((1, tn), lambda n, k: (0, n)),       # bias tile
        ],
        out_specs=pl.BlockSpec((B, tn), lambda n, k: (0, n)),
        scratch_shapes=[pltpu.VMEM((B, tn), jnp.float32)],    # f32 accumulator
        compiler_params=pltpu.CompilerParams(
            dimension_semantics=("parallel", "arbitrary"),
            vmem_limit_bytes=vmem_bytes,
        ),
    )(vec, w_bf16, b2)


def modulation_forward(vec, w, b, *, double: bool
                       ) -> Tuple[ModulationOut, Optional[ModulationOut]]:
    """Pallas equivalent of Modulation.forward."""
    multiplier = 6 if double else 3
    assert w.shape[1] == multiplier * vec.shape[1]
    out = modulation_linear(vec, w, b)          # (B, multiplier*dim)
    out = out[:, None, :]                       # match torch's [:, None, :]
    chunks = jnp.split(out, multiplier, axis=-1)
    first = ModulationOut(*chunks[:3])
    second = ModulationOut(*chunks[3:]) if double else None
    return first, second


# --------------------------------------------------------------------------- main

if __name__ == "__main__":
    B, dim = 2, 32
    key = jax.random.PRNGKey(0)
    kv, kw6, kb6, kw3, kb3 = jax.random.split(key, 5)

    vec = jax.random.normal(kv, (B, dim), jnp.float32)

    # double=True parameters (Linear: dim -> 6*dim)
    w6 = jax.random.normal(kw6, (dim, 6 * dim), jnp.float32) * 0.02
    b6 = jax.random.normal(kb6, (6 * dim,), jnp.float32) * 0.1
    # double=False parameters (Linear: dim -> 3*dim)
    w3 = jax.random.normal(kw3, (dim, 3 * dim), jnp.float32) * 0.02
    b3 = jax.random.normal(kb3, (3 * dim,), jnp.float32) * 0.1

    fwd_double = jax.jit(functools.partial(modulation_forward, double=True))
    fwd_single = jax.jit(functools.partial(modulation_forward, double=False))

    mod1, mod2 = fwd_double(vec, w6, b6)
    mod_s, mod_none = fwd_single(vec, w3, b3)
    jax.block_until_ready((mod1, mod2, mod_s))

    # shape / structure checks
    for m in (mod1, mod2, mod_s):
        for t in m:
            assert t.shape == (B, 1, dim) and t.dtype == jnp.float32
    assert mod_none is None

    # numerical check against a pure-JAX f32 reference of the torch module
    def ref(vec, w, b):
        return (jnp.dot(jax.nn.silu(vec), w) + b)[:, None, :]

    got6 = jnp.concatenate([mod1.shift, mod1.scale, mod1.gate,
                            mod2.shift, mod2.scale, mod2.gate], axis=-1)
    got3 = jnp.concatenate([mod_s.shift, mod_s.scale, mod_s.gate], axis=-1)
    assert jnp.allclose(got6, ref(vec, w6, b6), atol=5e-3, rtol=5e-3)
    assert jnp.allclose(got3, ref(vec, w3, b3), atol=5e-3, rtol=5e-3)
    assert bool(jnp.all(jnp.isfinite(got6))) and bool(jnp.all(jnp.isfinite(got3)))

    print("KERNEL_OK")
</pallas_src>

<mosaic_0001>
module attributes {stable_mosaic.version = 11 : i64} {
  func.func @_modulation_kernel(%arg0: i32, %arg1: i32, %arg2: memref<2x32xf32, #tpu.memory_space<vmem>>, %arg3: memref<32x192xbf16, #tpu.memory_space<vmem>>, %arg4: memref<1x192xf32, #tpu.memory_space<vmem>>, %arg5: memref<2x192xf32, #tpu.memory_space<vmem>>, %arg6: memref<2x192xf32, #tpu.memory_space<vmem>>) attributes {dimension_semantics = [#tpu.dimension_semantics<parallel>, #tpu.dimension_semantics<arbitrary>], iteration_bounds = array<i64: 1, 1>, scalar_prefetch = 0 : i64, scratch_operands = 1 : i64, tpu.core_type = #tpu.core_type<tc>, window_params = [{transform_indices = @transform_0, window_bounds = array<i64: 2, 32>}, {transform_indices = @transform_1, window_bounds = array<i64: 32, 192>}, {transform_indices = @transform_2, window_bounds = array<i64: 1, 192>}, {transform_indices = @transform_3, window_bounds = array<i64: 2, 192>}]} {
    %c0_i32 = arith.constant 0 : i32
    %0 = arith.cmpi eq, %arg1, %c0_i32 : i32
    %1 = arith.extui %0 : i1 to i32
    %c0_i32_0 = arith.constant 0 : i32
    %2 = arith.cmpi ne, %1, %c0_i32_0 : i32
    scf.if %2 {
      %cst_11 = arith.constant 0.000000e+00 : f32
      %19 = vector.broadcast %cst_11 : f32 to vector<2x192xf32>
      %c0_12 = arith.constant 0 : index
      %c0_13 = arith.constant 0 : index
      %20 = vector.load %arg6[%c0_12, %c0_13] : memref<2x192xf32, #tpu.memory_space<vmem>>, vector<2x192xf32>
      tpu.vector_store %arg6[%c0_12, %c0_13], %19 {strides = array<i32>} : memref<2x192xf32, #tpu.memory_space<vmem>>, vector<2x192xf32>,
    } else {
    }
    %c0 = arith.constant 0 : index
    %c0_1 = arith.constant 0 : index
    %3 = vector.load %arg2[%c0, %c0_1] : memref<2x32xf32, #tpu.memory_space<vmem>>, vector<2x32xf32>
    %4 = arith.negf %3 : vector<2x32xf32>
    %5 = math.exp %4 : vector<2x32xf32>
    %cst = arith.constant 1.000000e+00 : f32
    %6 = vector.broadcast %cst : f32 to vector<2x32xf32>
    %7 = arith.addf %6, %5 : vector<2x32xf32>
    %8 = arith.divf %6, %7 : vector<2x32xf32>
    %9 = arith.mulf %3, %8 : vector<2x32xf32>
    %10 = arith.truncf %9 : vector<2x32xf32> to vector<2x32xbf16>
    %c0_2 = arith.constant 0 : index
    %c0_3 = arith.constant 0 : index
    %11 = vector.load %arg6[%c0_2, %c0_3] : memref<2x192xf32, #tpu.memory_space<vmem>>, vector<2x192xf32>
    %c0_4 = arith.constant 0 : index
    %c0_5 = arith.constant 0 : index
    %12 = vector.load %arg3[%c0_4, %c0_5] : memref<32x192xbf16, #tpu.memory_space<vmem>>, vector<32x192xbf16>
    %cst_6 = arith.constant dense<0.000000e+00> : vector<2x192xf32>
    %13 = tpu.matmul %10, %12, %cst_6 {dimension_numbers = #tpu.dot_dimension_numbers<[1], [0], [0], [1], [0, 0, 1, 1], [], []>} : vector<2x32xbf16>, vector<32x192xbf16>, vector<2x192xf32> -> vector<2x192xf32>
    %14 = arith.addf %11, %13 : vector<2x192xf32>
    %c0_7 = arith.constant 0 : index
    %c0_8 = arith.constant 0 : index
    %15 = vector.load %arg6[%c0_7, %c0_8] : memref<2x192xf32, #tpu.memory_space<vmem>>, vector<2x192xf32>
    tpu.vector_store %arg6[%c0_7, %c0_8], %14 {strides = array<i32>} : memref<2x192xf32, #tpu.memory_space<vmem>>, vector<2x192xf32>,
    %c0_i32_9 = arith.constant 0 : i32
    %16 = arith.cmpi eq, %arg1, %c0_i32_9 : i32
    %17 = arith.extui %16 : i1 to i32
    %c0_i32_10 = arith.constant 0 : i32
    %18 = arith.cmpi ne, %17, %c0_i32_10 : i32
    scf.if %18 {
      %c0_11 = arith.constant 0 : index
      %c0_12 = arith.constant 0 : index
      %19 = vector.load %arg6[%c0_11, %c0_12] : memref<2x192xf32, #tpu.memory_space<vmem>>, vector<2x192xf32>
      %c0_13 = arith.constant 0 : index
      %c0_14 = arith.constant 0 : index
      %20 = vector.load %arg4[%c0_13, %c0_14] : memref<1x192xf32, #tpu.memory_space<vmem>>, vector<1x192xf32>
      %21 = vector.broadcast %20 : vector<1x192xf32> to vector<2x192xf32>
      %22 = arith.addf %19, %21 : vector<2x192xf32>
      %c0_15 = arith.constant 0 : index
      %c0_16 = arith.constant 0 : index
      %23 = vector.load %arg5[%c0_15, %c0_16] : memref<2x192xf32, #tpu.memory_space<vmem>>, vector<2x192xf32>
      tpu.vector_store %arg5[%c0_15, %c0_16], %22 {strides = array<i32>} : memref<2x192xf32, #tpu.memory_space<vmem>>, vector<2x192xf32>,
    } else {
    }
    return
  }
  func.func @transform_0(%arg0: i32, %arg1: i32) -> (i32, i32) {
    %c0_i32 = arith.constant 0 : i32
    %c0_i32_0 = arith.constant 0 : i32
    return %c0_i32, %arg1 : i32, i32
  }
  func.func @transform_1(%arg0: i32, %arg1: i32) -> (i32, i32) {
    %c0_i32 = arith.constant 0 : i32
    return %arg1, %arg0 : i32, i32
  }
  func.func @transform_2(%arg0: i32, %arg1: i32) -> (i32, i32) {
    %c0_i32 = arith.constant 0 : i32
    %c0_i32_0 = arith.constant 0 : i32
    return %c0_i32, %arg0 : i32, i32
  }
  func.func @transform_3(%arg0: i32, %arg1: i32) -> (i32, i32) {
    %c0_i32 = arith.constant 0 : i32
    %c0_i32_0 = arith.constant 0 : i32
    return %c0_i32, %arg0 : i32, i32
  }
}

</mosaic_0001>

<bundles_post_ra>
// kernel: modulation_forward.1
= control target key start
LH: loop header
LB: loop body
LE: loop exit
PB: predicated region body
PF: predicated region fallthrough
CT: control target
= control target key end

     0   :  { %v166_v1 = vmov 0   ;;  %vm57_vm0 = vcmask 261120   ;;  %vm19_vm1 = vcmask 1041408   ;;  %vm20_vm2 = vcmask 519170   ;;  %s220_s1 = inlined_call_operand.vmem [shape: bf16[32,192], index: 1, kind: input, shape index: {}]   ;;  %s221_s0 = inlined_call_operand.vmem [shape: f32[2,32], index: 0, kind: input, shape index: {}]   ;;  %s222_s2 = inlined_call_operand.vmem [shape: f32[1,192], index: 2, kind: input, shape index: {}]   ;;  %s223_s3 = inlined_call_operand.vmem [shape: f32[2,192], index: 3, kind: output, shape index: {}]  }
   0x1   :  { %v156_v0 = vld [vmem:[%s220_s1 + $0x4] ss:$8 sps:$4 sm:$0xff]   ;;  %93 = vmatprep.mubr.bf16.mxu0 %v166_v1  ;;  %v158_v2 = vld [vmem:[%s220_s1] ss:$8 sps:$4 sm:$0xff]   ;;  %v159_v3 = vld [vmem:[%s220_s1 + $0x14] ss:$8 sps:$4 sm:$0xff]   ;;  %v108_v16 = vlaneseq }
   0x2   :  { %61 = vmatprep.subr.bf16.mxu0 %v156_v0  ;;  %v23_v4 = vld [vmem:[%s221_s0] sm:$0x3]  ;;  %v161_v5 = vld [vmem:[%s220_s1 + $0x10] ss:$8 sps:$4 sm:$0xff]   ;;  %vm204_vm3 = vmor %vm20_vm2, %vm19_vm1  ;;  %v167_v13 = vmov 0.0  }
   0x3   :  { %62 = vmatpush1.bf16.msra.mxu0 %v158_v2  ;;  %v147_v6 = vmul.f32 -1.442695, %v23_v4  ;;  %22 = vst.msk [vmem:[#allocation2] sm:$0xf] %vm204_vm3, %v167_v13  ;;  %v168_v14 = vmov 1983009808  }
   0x4   :  { %63 = vmatprep.subr.bf16.mxu0 %v159_v3  ;;  %v106_v15 = vunpack.c.l.s4 %v168_v14  ;;  %v109_v18 = vshrl.u32 %v108_v16, 7  ;;  %v122_v24 = vld [vmem:[%s222_s2] sm:$0x3] }
   0x5   :  { %162 = vpow2.f32 %v147_v6 }
   0x6   :  { %v107_v17 = vunpack.c.0.s8 %v106_v15  ;;  %v126_v21 = vsub.s32 0, %v109_v18  ;;  %v130_v22 = vsub.s32 1, %v109_v18 }
   0x7   :  { %64 = vmatpush1.bf16.msra.mxu0 %v161_v5 }
   0x8   :  { %v110_v20 = vsub.s32 %v107_v17, %v109_v18  ;;  %v127_v30 = vrot.slane %v122_v24, %v126_v21  ;;  %v131_v31 = vrot.slane %v122_v24, %v130_v22 }
   0xa   :  { %v32_v27 = vld [vmem:[#allocation2] sm:$0xf]  ;;  %v132_v33 = vcombine.low %v127_v30, %v131_v31 }
   0xc   :  { %v139_v34 = vrot.slane %v132_v33, %v110_v20 }
   0xf   :  { %v163_v7 = vpop.eup %162 }
  0x10   :  { %v27_v8 = vadd.f32 1.0, %v163_v7 }
  0x12   :  { %164 = vrcp.f32 %v27_v8 }
  0x1c   :  { %v165_v9 = vpop.eup %164 }
  0x1d   :  { %v30_v10 = vmul.f32 %v165_v9, %v23_v4 }
  0x1f   :  { %v31_v11 = vpack.c.bf16 %v30_v10, %v30_v10 }
  0x21   :  { %152 = vmatmul.mubr.msk.bf16.vlgmr.msra.gmra.mrb[0].mxu0 %vm57_vm0, %v31_v11 }
  0xf4   :  { %v95_v19 = vpop.f32.mrb[0].mxu0 }
  0xf5   :  { %v97_v23 = vpop.f32.mrb[1].mxu0 }
  0xf6   :  { %v104_v25 = vcombine.low %v95_v19, %v97_v23  ;;  %v99_v26 = vpop.f32.mrb[2].mxu0 }
  0xf7   :  { %v100_v28 = vpop.f32.mrb[3].mxu0 }
  0xf8   :  { %v111_v29 = vrot.slane %v104_v25, %v110_v20 }
  0xfa   :  { %v113_v32 = vadd.f32 %v111_v29, %v32_v27 }
  0xfc   :  { %117 = vst.msk [vmem:[#allocation2] sm:$0xf] %vm204_vm3, %v113_v32 }
 0x103   :  { %v121_v35 = vld [vmem:[#allocation2] sm:$0xf] }
 0x104   :  { %v141_v36 = vadd.f32 %v139_v34, %v121_v35 }
 0x106   :  { %142 = vst.msk [vmem:[%s223_s3] sm:$0xf] %vm204_vm3, %v141_v36 }

</bundles_post_ra>
